<compile_context>
chip_gen: v6e
topology: v6e:2x2x1
jax: 0.10.0
libtpu: 0.0.40
codegen_flags: <defaults>
</compile_context>

<pallas_src>
import jax
import jax.numpy as jnp
from jax.experimental import pallas as pl
from jax.experimental.pallas import tpu as pltpu

_FUSED_BYTES_LIMIT = 2 << 20  # below this total footprint, use the fused path


def _softplus(x):
    # numerically stable softplus: max(x, 0) + log1p(exp(-|x|))
    return jnp.maximum(x, 0.0) + jnp.log1p(jnp.exp(-jnp.abs(x)))


def _make_member_kernel(n_hidden, max_log_std, min_log_std):
    """Kernel for the gridded path: one ensemble member, one B tile per step."""
    n_in = 1 + 2 * n_hidden + 4  # x, (w,b)*hidden, w_mean, b_mean, w_lstd, b_lstd

    def kernel(*refs):
        in_refs, out_refs = refs[:n_in], refs[n_in:]
        mean_ref, log_std_ref = out_refs

        h = in_refs[0][0]                     # (TB, D_in), compute dtype
        idx = 1
        for _ in range(n_hidden):
            w_ref, b_ref = in_refs[idx], in_refs[idx + 1]
            idx += 2
            h = jnp.dot(h, w_ref[0], preferred_element_type=jnp.float32) + b_ref[0]
            h = jnp.maximum(h, 0.0).astype(w_ref.dtype)   # keep MXU inputs narrow

        wm_ref, bm_ref, ws_ref, bs_ref = in_refs[idx:idx + 4]
        mean = jnp.dot(h, wm_ref[0], preferred_element_type=jnp.float32) + bm_ref[0]
        ls = jnp.dot(h, ws_ref[0], preferred_element_type=jnp.float32) + bs_ref[0]

        ls = max_log_std - _softplus(max_log_std - ls)
        ls = min_log_std + _softplus(ls - min_log_std)

        mean_ref[0] = mean.astype(mean_ref.dtype)
        log_std_ref[0] = ls.astype(log_std_ref.dtype)

    return kernel


def _make_fused_kernel(n_hidden, max_log_std, min_log_std):
    """Kernel for the fused path: a block of ensemble members per step."""
    n_in = 1 + 2 * n_hidden + 4

    def kernel(*refs):
        in_refs, out_refs = refs[:n_in], refs[n_in:]
        mean_ref, log_std_ref = out_refs

        h = in_refs[0][...]                   # (Eb, B, D_in)
        idx = 1
        for _ in range(n_hidden):
            w_ref, b_ref = in_refs[idx], in_refs[idx + 1]
            idx += 2
            h = jnp.einsum("ebi,eio->ebo", h, w_ref[...],
                           preferred_element_type=jnp.float32) + b_ref[...]
            h = jnp.maximum(h, 0.0).astype(w_ref.dtype)

        wm_ref, bm_ref, ws_ref, bs_ref = in_refs[idx:idx + 4]
        mean = jnp.einsum("ebi,eio->ebo", h, wm_ref[...],
                          preferred_element_type=jnp.float32) + bm_ref[...]
        ls = jnp.einsum("ebi,eio->ebo", h, ws_ref[...],
                        preferred_element_type=jnp.float32) + bs_ref[...]

        ls = max_log_std - _softplus(max_log_std - ls)
        ls = min_log_std + _softplus(ls - min_log_std)

        mean_ref[...] = mean.astype(mean_ref.dtype)
        log_std_ref[...] = ls.astype(log_std_ref.dtype)

    return kernel


def _pick_b_tile(B, x_row_bytes, out_row_bytes, per_member_wb_bytes,
                 budget=40 << 20):
    """Largest B tile (multiple of 8, divisor of B, <=1024) fitting the budget."""
    def est(tb):
        # double-buffered x tile + resident weights/biases + two output tiles
        return 2 * (tb * x_row_bytes + per_member_wb_bytes + tb * out_row_bytes)

    start = max(8, (min(B, 1024) // 8) * 8)
    for tb in range(start, 7, -8):
        if B % tb == 0 and est(tb) <= budget:
            return tb, est(tb)
    # TODO(synk): pad B when it is not a multiple of 8 / exceeds the VMEM budget.
    return B, est(B)


def ensemble_gaussian_mlp(x, params, *, output_dim, max_log_std=2.0,
                          min_log_std=-20.0, compute_dtype=None,
                          force_grid=False, b_tile=None):
    """x: (E, B, D_in). params: dict with w1,b1,...,wL,bL (ensemble-major)."""
    n_layers = len(params) // 2
    n_hidden = n_layers - 1
    E, B, D_in = x.shape
    out_dtype = x.dtype

    hidden_w = [params[f"w{i + 1}"] for i in range(n_hidden)]
    hidden_b = [params[f"b{i + 1}"] for i in range(n_hidden)]
    w_last = params[f"w{n_layers}"]
    b_last = params[f"b{n_layers}"]
    assert w_last.shape[-1] == 2 * output_dim

    # Split the Gaussian head columns on HBM (free slice) so the kernel never
    # slices the MXU result at a non-128-aligned lane offset.
    w_mean, w_lstd = w_last[..., :output_dim], w_last[..., output_dim:]
    b_mean, b_lstd = b_last[..., :output_dim], b_last[..., output_dim:]

    if compute_dtype is not None:
        # Narrow MXU inputs; accumulation stays f32 (preferred_element_type),
        # biases and the softplus head stay f32.
        x = x.astype(compute_dtype)
        hidden_w = [w.astype(compute_dtype) for w in hidden_w]
        w_mean = w_mean.astype(compute_dtype)
        w_lstd = w_lstd.astype(compute_dtype)

    inputs = [x]
    for w, b in zip(hidden_w, hidden_b):
        inputs += [w, b]
    inputs += [w_mean, b_mean, w_lstd, b_lstd]

    out_shape = (jax.ShapeDtypeStruct((E, B, output_dim), out_dtype),
                 jax.ShapeDtypeStruct((E, B, output_dim), out_dtype))

    total_bytes = sum(int(a.size) * a.dtype.itemsize for a in inputs)
    total_bytes += 2 * E * B * output_dim * jnp.dtype(out_dtype).itemsize

    if not force_grid and total_bytes <= _FUSED_BYTES_LIMIT:
        # ---- fused path: 1-2 grid steps over the whole ensemble ----
        G = 2 if (E % 2 == 0 and E >= 2) else 1   # keep both v7x TCs busy
        Eb = E // G

        def fused_spec(a):
            tail = tuple(a.shape[1:])
            return pl.BlockSpec((Eb,) + tail, lambda g: (g,) + (0,) * len(tail))

        kernel = _make_fused_kernel(n_hidden, float(max_log_std), float(min_log_std))
        return pl.pallas_call(
            kernel,
            out_shape=out_shape,
            grid_spec=pltpu.PrefetchScalarGridSpec(
                num_scalar_prefetch=0,
                grid=(G,),
                in_specs=[fused_spec(a) for a in inputs],
                out_specs=[
                    pl.BlockSpec((Eb, B, output_dim), lambda g: (g, 0, 0)),
                    pl.BlockSpec((Eb, B, output_dim), lambda g: (g, 0, 0)),
                ]),
            compiler_params=pltpu.CompilerParams(
                dimension_semantics=("parallel",)),
        )(*inputs)

    # ---- gridded path: grid = (E, B // TB), weights resident across b ----
    in_itemsize = jnp.dtype(x.dtype).itemsize
    out_itemsize = jnp.dtype(out_dtype).itemsize
    per_member_wb = sum(int(a.size) * a.dtype.itemsize for a in inputs[1:]) // E

    if b_tile is None:
        TB, vmem_est = _pick_b_tile(B, D_in * in_itemsize,
                                    2 * output_dim * out_itemsize, per_member_wb)
    else:
        TB = int(b_tile)
        assert B % TB == 0 and (TB % 8 == 0 or TB == B)
        vmem_est = 2 * (TB * D_in * in_itemsize + per_member_wb
                        + 2 * TB * output_dim * out_itemsize)
    nb = B // TB

    # TODO(synk): if a single member's weights alone approach the VMEM budget
    # (e.g. v7x's 64 MiB), add a K/N grid axis with an f32 accumulator scratch
    # instead of loading whole weight matrices per step.
    vmem_limit = None
    if vmem_est > (16 << 20):
        vmem_limit = int(min(2 * vmem_est, 64 << 20))

    def member_spec(a):
        tail = tuple(a.shape[1:])
        return pl.BlockSpec((1,) + tail, lambda e, b: (e,) + (0,) * len(tail))

    in_specs = [pl.BlockSpec((1, TB, D_in), lambda e, b: (e, b, 0))]
    in_specs += [member_spec(a) for a in inputs[1:]]
    out_specs = [pl.BlockSpec((1, TB, output_dim), lambda e, b: (e, b, 0)),
                 pl.BlockSpec((1, TB, output_dim), lambda e, b: (e, b, 0))]

    kernel = _make_member_kernel(n_hidden, float(max_log_std), float(min_log_std))
    return pl.pallas_call(
        kernel,
        out_shape=out_shape,
        grid_spec=pltpu.PrefetchScalarGridSpec(
            num_scalar_prefetch=0,
            grid=(E, nb),
            in_specs=in_specs,
            out_specs=out_specs),
        compiler_params=pltpu.CompilerParams(
            dimension_semantics=("parallel", "arbitrary"),
            vmem_limit_bytes=vmem_limit),
    )(*inputs)


def init_params(key, input_dim, hidden_dims, output_dim, ensemble_size,
                dtype=jnp.float32):
    """Deterministic synthetic init (He-style scaling like init_weights w/ ReLU)."""
    dims = [input_dim] + list(hidden_dims) + [2 * output_dim]
    params = {}
    for i in range(len(dims) - 1):
        key, kw = jax.random.split(key)
        fan_in = dims[i]
        scale = jnp.sqrt(2.0 / fan_in).astype(dtype)
        w = jax.random.normal(kw, (ensemble_size, dims[i], dims[i + 1]), dtype) * scale
        b = jnp.zeros((ensemble_size, 1, dims[i + 1]), dtype)
        params[f"w{i + 1}"] = w
        params[f"b{i + 1}"] = b
    return params


def reference_forward(x, params, output_dim, max_log_std=2.0, min_log_std=-20.0):
    n_layers = len(params) // 2
    h = x
    for i in range(n_layers - 1):
        h = jnp.maximum(
            jnp.einsum("ebi,eio->ebo", h, params[f"w{i + 1}"]) + params[f"b{i + 1}"],
            0.0)
    out = jnp.einsum("ebi,eio->ebo", h, params[f"w{n_layers}"]) + params[f"b{n_layers}"]
    mean, log_std = out[..., :output_dim], out[..., output_dim:]
    log_std = max_log_std - jax.nn.softplus(max_log_std - log_std)
    log_std = min_log_std + jax.nn.softplus(log_std - min_log_std)
    return mean, log_std


if __name__ == "__main__":
    # small shapes consistent with the module
    ensemble_size = 4
    batch = 8
    input_dim = 16
    hidden_dims = (32, 32)
    output_dim = 8

    key = jax.random.PRNGKey(0)
    kx, kp = jax.random.split(key)
    x = jax.random.normal(kx, (ensemble_size, batch, input_dim), jnp.float32)
    params = init_params(kp, input_dim, hidden_dims, output_dim, ensemble_size)

    ref_mean, ref_log_std = reference_forward(x, params, output_dim)

    # 1) auto path (fused, f32) at the toy shapes.
    mean, log_std = ensemble_gaussian_mlp(x, params, output_dim=output_dim)
    jax.block_until_ready((mean, log_std))
    assert mean.shape == (ensemble_size, batch, output_dim)
    assert log_std.shape == (ensemble_size, batch, output_dim)
    assert jnp.allclose(mean, ref_mean, atol=1e-4, rtol=1e-4)
    assert jnp.allclose(log_std, ref_log_std, atol=1e-4, rtol=1e-4)

    # 2) gridded path (resident weights, multiple B tiles), f32.
    batch2 = 256
    kx2, _ = jax.random.split(kx)
    x2 = jax.random.normal(kx2, (ensemble_size, batch2, input_dim), jnp.float32)
    ref_mean2, ref_log_std2 = reference_forward(x2, params, output_dim)
    mean2, log_std2 = ensemble_gaussian_mlp(
        x2, params, output_dim=output_dim, force_grid=True, b_tile=128)
    jax.block_until_ready((mean2, log_std2))
    assert jnp.allclose(mean2, ref_mean2, atol=1e-4, rtol=1e-4)
    assert jnp.allclose(log_std2, ref_log_std2, atol=1e-4, rtol=1e-4)

    # 3) bf16 MXU-input path (f32 accumulation) — looser tolerance.
    mean_b, log_std_b = ensemble_gaussian_mlp(
        x, params, output_dim=output_dim, compute_dtype=jnp.bfloat16)
    jax.block_until_ready((mean_b, log_std_b))
    assert jnp.allclose(mean_b.astype(jnp.float32), ref_mean, atol=1e-1, rtol=1e-1)
    assert jnp.allclose(log_std_b.astype(jnp.float32), ref_log_std, atol=1e-1, rtol=1e-1)

    print("KERNEL_OK")
</pallas_src>

<mosaic_0001>
module attributes {stable_mosaic.version = 11 : i64} {
  func.func @kernel(%arg0: i32, %arg1: memref<2x8x16xf32, #tpu.memory_space<vmem>>, %arg2: memref<2x16x32xf32, #tpu.memory_space<vmem>>, %arg3: memref<2x1x32xf32, #tpu.memory_space<vmem>>, %arg4: memref<2x32x32xf32, #tpu.memory_space<vmem>>, %arg5: memref<2x1x32xf32, #tpu.memory_space<vmem>>, %arg6: memref<2x32x8xf32, #tpu.memory_space<vmem>>, %arg7: memref<2x1x8xf32, #tpu.memory_space<vmem>>, %arg8: memref<2x32x8xf32, #tpu.memory_space<vmem>>, %arg9: memref<2x1x8xf32, #tpu.memory_space<vmem>>, %arg10: memref<2x8x8xf32, #tpu.memory_space<vmem>>, %arg11: memref<2x8x8xf32, #tpu.memory_space<vmem>>) attributes {dimension_semantics = [#tpu.dimension_semantics<parallel>], iteration_bounds = array<i64: 2>, scalar_prefetch = 0 : i64, scratch_operands = 0 : i64, tpu.core_type = #tpu.core_type<tc>, window_params = [{transform_indices = @transform_0, window_bounds = array<i64: 2, 8, 16>}, {transform_indices = @transform_1, window_bounds = array<i64: 2, 16, 32>}, {transform_indices = @transform_2, window_bounds = array<i64: 2, 1, 32>}, {transform_indices = @transform_3, window_bounds = array<i64: 2, 32, 32>}, {transform_indices = @transform_4, window_bounds = array<i64: 2, 1, 32>}, {transform_indices = @transform_5, window_bounds = array<i64: 2, 32, 8>}, {transform_indices = @transform_6, window_bounds = array<i64: 2, 1, 8>}, {transform_indices = @transform_7, window_bounds = array<i64: 2, 32, 8>}, {transform_indices = @transform_8, window_bounds = array<i64: 2, 1, 8>}, {transform_indices = @transform_9, window_bounds = array<i64: 2, 8, 8>}, {transform_indices = @transform_10, window_bounds = array<i64: 2, 8, 8>}]} {
    %c0 = arith.constant 0 : index
    %c0_0 = arith.constant 0 : index
    %c0_1 = arith.constant 0 : index
    %0 = vector.load %arg1[%c0, %c0_0, %c0_1] : memref<2x8x16xf32, #tpu.memory_space<vmem>>, vector<2x8x16xf32>
    %c0_2 = arith.constant 0 : index
    %c0_3 = arith.constant 0 : index
    %c0_4 = arith.constant 0 : index
    %1 = vector.load %arg2[%c0_2, %c0_3, %c0_4] : memref<2x16x32xf32, #tpu.memory_space<vmem>>, vector<2x16x32xf32>
    "tpu.trace_start"() <{level = 10 : i32, message = "ebi,eio->ebo"}> : () -> ()
    %cst = arith.constant dense<0.000000e+00> : vector<2x8x32xf32>
    %2 = tpu.matmul %0, %1, %cst {dimension_numbers = #tpu.dot_dimension_numbers<[2], [1], [1], [2], [0, 0, 0, 1, 1, 2], [0], [0]>} : vector<2x8x16xf32>, vector<2x16x32xf32>, vector<2x8x32xf32> -> vector<2x8x32xf32>
    "tpu.trace_stop"() : () -> ()
    %c0_5 = arith.constant 0 : index
    %c0_6 = arith.constant 0 : index
    %c0_7 = arith.constant 0 : index
    %3 = vector.load %arg3[%c0_5, %c0_6, %c0_7] : memref<2x1x32xf32, #tpu.memory_space<vmem>>, vector<2x1x32xf32>
    %4 = vector.broadcast %3 : vector<2x1x32xf32> to vector<2x8x32xf32>
    %5 = arith.addf %2, %4 : vector<2x8x32xf32>
    %cst_8 = arith.constant 0.000000e+00 : f32
    %6 = vector.broadcast %cst_8 : f32 to vector<2x8x32xf32>
    %7 = arith.maximumf %5, %6 : vector<2x8x32xf32>
    %c0_9 = arith.constant 0 : index
    %c0_10 = arith.constant 0 : index
    %c0_11 = arith.constant 0 : index
    %8 = vector.load %arg4[%c0_9, %c0_10, %c0_11] : memref<2x32x32xf32, #tpu.memory_space<vmem>>, vector<2x32x32xf32>
    "tpu.trace_start"() <{level = 10 : i32, message = "ebi,eio->ebo"}> : () -> ()
    %cst_12 = arith.constant dense<0.000000e+00> : vector<2x8x32xf32>
    %9 = tpu.matmul %7, %8, %cst_12 {dimension_numbers = #tpu.dot_dimension_numbers<[2], [1], [1], [2], [0, 0, 0, 1, 1, 2], [0], [0]>} : vector<2x8x32xf32>, vector<2x32x32xf32>, vector<2x8x32xf32> -> vector<2x8x32xf32>
    "tpu.trace_stop"() : () -> ()
    %c0_13 = arith.constant 0 : index
    %c0_14 = arith.constant 0 : index
    %c0_15 = arith.constant 0 : index
    %10 = vector.load %arg5[%c0_13, %c0_14, %c0_15] : memref<2x1x32xf32, #tpu.memory_space<vmem>>, vector<2x1x32xf32>
    %11 = vector.broadcast %10 : vector<2x1x32xf32> to vector<2x8x32xf32>
    %12 = arith.addf %9, %11 : vector<2x8x32xf32>
    %cst_16 = arith.constant 0.000000e+00 : f32
    %13 = vector.broadcast %cst_16 : f32 to vector<2x8x32xf32>
    %14 = arith.maximumf %12, %13 : vector<2x8x32xf32>
    %c0_17 = arith.constant 0 : index
    %c0_18 = arith.constant 0 : index
    %c0_19 = arith.constant 0 : index
    %15 = vector.load %arg6[%c0_17, %c0_18, %c0_19] : memref<2x32x8xf32, #tpu.memory_space<vmem>>, vector<2x32x8xf32>
    "tpu.trace_start"() <{level = 10 : i32, message = "ebi,eio->ebo"}> : () -> ()
    %cst_20 = arith.constant dense<0.000000e+00> : vector<2x8x8xf32>
    %16 = tpu.matmul %14, %15, %cst_20 {dimension_numbers = #tpu.dot_dimension_numbers<[2], [1], [1], [2], [0, 0, 0, 1, 1, 2], [0], [0]>} : vector<2x8x32xf32>, vector<2x32x8xf32>, vector<2x8x8xf32> -> vector<2x8x8xf32>
    "tpu.trace_stop"() : () -> ()
    %c0_21 = arith.constant 0 : index
    %c0_22 = arith.constant 0 : index
    %c0_23 = arith.constant 0 : index
    %17 = vector.load %arg7[%c0_21, %c0_22, %c0_23] : memref<2x1x8xf32, #tpu.memory_space<vmem>>, vector<2x1x8xf32>
    %18 = vector.broadcast %17 : vector<2x1x8xf32> to vector<2x8x8xf32>
    %19 = arith.addf %16, %18 : vector<2x8x8xf32>
    %c0_24 = arith.constant 0 : index
    %c0_25 = arith.constant 0 : index
    %c0_26 = arith.constant 0 : index
    %20 = vector.load %arg8[%c0_24, %c0_25, %c0_26] : memref<2x32x8xf32, #tpu.memory_space<vmem>>, vector<2x32x8xf32>
    "tpu.trace_start"() <{level = 10 : i32, message = "ebi,eio->ebo"}> : () -> ()
    %cst_27 = arith.constant dense<0.000000e+00> : vector<2x8x8xf32>
    %21 = tpu.matmul %14, %20, %cst_27 {dimension_numbers = #tpu.dot_dimension_numbers<[2], [1], [1], [2], [0, 0, 0, 1, 1, 2], [0], [0]>} : vector<2x8x32xf32>, vector<2x32x8xf32>, vector<2x8x8xf32> -> vector<2x8x8xf32>
    "tpu.trace_stop"() : () -> ()
    %c0_28 = arith.constant 0 : index
    %c0_29 = arith.constant 0 : index
    %c0_30 = arith.constant 0 : index
    %22 = vector.load %arg9[%c0_28, %c0_29, %c0_30] : memref<2x1x8xf32, #tpu.memory_space<vmem>>, vector<2x1x8xf32>
    %23 = vector.broadcast %22 : vector<2x1x8xf32> to vector<2x8x8xf32>
    %24 = arith.addf %21, %23 : vector<2x8x8xf32>
    %cst_31 = arith.constant 2.000000e+00 : f32
    %25 = vector.broadcast %cst_31 : f32 to vector<2x8x8xf32>
    %26 = arith.subf %25, %24 : vector<2x8x8xf32>
    %cst_32 = arith.constant 0.000000e+00 : f32
    %27 = vector.broadcast %cst_32 : f32 to vector<2x8x8xf32>
    %28 = arith.maximumf %26, %27 : vector<2x8x8xf32>
    %29 = math.absf %26 : vector<2x8x8xf32>
    %cst_33 = arith.constant 0.000000e+00 : f32
    %30 = vector.broadcast %cst_33 : f32 to vector<2x8x8xf32>
    %31 = arith.subf %30, %29 : vector<2x8x8xf32>
    %32 = math.exp %31 : vector<2x8x8xf32>
    %33 = math.log1p %32 : vector<2x8x8xf32>
    %34 = arith.addf %28, %33 : vector<2x8x8xf32>
    %cst_34 = arith.constant 2.000000e+00 : f32
    %35 = vector.broadcast %cst_34 : f32 to vector<2x8x8xf32>
    %36 = arith.subf %35, %34 : vector<2x8x8xf32>
    %cst_35 = arith.constant -2.000000e+01 : f32
    %37 = vector.broadcast %cst_35 : f32 to vector<2x8x8xf32>
    %38 = arith.subf %36, %37 : vector<2x8x8xf32>
    %cst_36 = arith.constant 0.000000e+00 : f32
    %39 = vector.broadcast %cst_36 : f32 to vector<2x8x8xf32>
    %40 = arith.maximumf %38, %39 : vector<2x8x8xf32>
    %41 = math.absf %38 : vector<2x8x8xf32>
    %cst_37 = arith.constant 0.000000e+00 : f32
    %42 = vector.broadcast %cst_37 : f32 to vector<2x8x8xf32>
    %43 = arith.subf %42, %41 : vector<2x8x8xf32>
    %44 = math.exp %43 : vector<2x8x8xf32>
    %45 = math.log1p %44 : vector<2x8x8xf32>
    %46 = arith.addf %40, %45 : vector<2x8x8xf32>
    %cst_38 = arith.constant -2.000000e+01 : f32
    %47 = vector.broadcast %cst_38 : f32 to vector<2x8x8xf32>
    %48 = arith.addf %47, %46 : vector<2x8x8xf32>
    %c0_39 = arith.constant 0 : index
    %c0_40 = arith.constant 0 : index
    %c0_41 = arith.constant 0 : index
    %49 = vector.load %arg10[%c0_39, %c0_40, %c0_41] : memref<2x8x8xf32, #tpu.memory_space<vmem>>, vector<2x8x8xf32>
    tpu.vector_store %arg10[%c0_39, %c0_40, %c0_41], %19 {strides = array<i32>} : memref<2x8x8xf32, #tpu.memory_space<vmem>>, vector<2x8x8xf32>,
    %c0_42 = arith.constant 0 : index
    %c0_43 = arith.constant 0 : index
    %c0_44 = arith.constant 0 : index
    %50 = vector.load %arg11[%c0_42, %c0_43, %c0_44] : memref<2x8x8xf32, #tpu.memory_space<vmem>>, vector<2x8x8xf32>
    tpu.vector_store %arg11[%c0_42, %c0_43, %c0_44], %48 {strides = array<i32>} : memref<2x8x8xf32, #tpu.memory_space<vmem>>, vector<2x8x8xf32>,
    return
  }
  func.func @transform_0(%arg0: i32) -> (i32, i32, i32) {
    %c0_i32 = arith.constant 0 : i32
    %c0_i32_0 = arith.constant 0 : i32
    %c0_i32_1 = arith.constant 0 : i32
    return %arg0, %c0_i32, %c0_i32_0 : i32, i32, i32
  }
  func.func @transform_1(%arg0: i32) -> (i32, i32, i32) {
    %c0_i32 = arith.constant 0 : i32
    %c0_i32_0 = arith.constant 0 : i32
    %c0_i32_1 = arith.constant 0 : i32
    return %arg0, %c0_i32, %c0_i32_0 : i32, i32, i32
  }
  func.func @transform_2(%arg0: i32) -> (i32, i32, i32) {
    %c0_i32 = arith.constant 0 : i32
    %c0_i32_0 = arith.constant 0 : i32
    %c0_i32_1 = arith.constant 0 : i32
    return %arg0, %c0_i32, %c0_i32_0 : i32, i32, i32
  }
  func.func @transform_3(%arg0: i32) -> (i32, i32, i32) {
    %c0_i32 = arith.constant 0 : i32
    %c0_i32_0 = arith.constant 0 : i32
    %c0_i32_1 = arith.constant 0 : i32
    return %arg0, %c0_i32, %c0_i32_0 : i32, i32, i32
  }
  func.func @transform_4(%arg0: i32) -> (i32, i32, i32) {
    %c0_i32 = arith.constant 0 : i32
    %c0_i32_0 = arith.constant 0 : i32
    %c0_i32_1 = arith.constant 0 : i32
    return %arg0, %c0_i32, %c0_i32_0 : i32, i32, i32
  }
  func.func @transform_5(%arg0: i32) -> (i32, i32, i32) {
    %c0_i32 = arith.constant 0 : i32
    %c0_i32_0 = arith.constant 0 : i32
    %c0_i32_1 = arith.constant 0 : i32
    return %arg0, %c0_i32, %c0_i32_0 : i32, i32, i32
  }
  func.func @transform_6(%arg0: i32) -> (i32, i32, i32) {
    %c0_i32 = arith.constant 0 : i32
    %c0_i32_0 = arith.constant 0 : i32
    %c0_i32_1 = arith.constant 0 : i32
    return %arg0, %c0_i32, %c0_i32_0 : i32, i32, i32
  }
  func.func @transform_7(%arg0: i32) -> (i32, i32, i32) {
    %c0_i32 = arith.constant 0 : i32
    %c0_i32_0 = arith.constant 0 : i32
    %c0_i32_1 = arith.constant 0 : i32
    return %arg0, %c0_i32, %c0_i32_0 : i32, i32, i32
  }
  func.func @transform_8(%arg0: i32) -> (i32, i32, i32) {
    %c0_i32 = arith.constant 0 : i32
    %c0_i32_0 = arith.constant 0 : i32
    %c0_i32_1 = arith.constant 0 : i32
    return %arg0, %c0_i32, %c0_i32_0 : i32, i32, i32
  }
  func.func @transform_9(%arg0: i32) -> (i32, i32, i32) {
    %c0_i32 = arith.constant 0 : i32
    %c0_i32_0 = arith.constant 0 : i32
    %c0_i32_1 = arith.constant 0 : i32
    return %arg0, %c0_i32, %c0_i32_0 : i32, i32, i32
  }
  func.func @transform_10(%arg0: i32) -> (i32, i32, i32) {
    %c0_i32 = arith.constant 0 : i32
    %c0_i32_0 = arith.constant 0 : i32
    %c0_i32_1 = arith.constant 0 : i32
    return %arg0, %c0_i32, %c0_i32_0 : i32, i32, i32
  }
}

</mosaic_0001>

<bundles_post_ra>
// kernel: tpu_custom_call.1
= control target key start
LH: loop header
LB: loop body
LE: loop exit
PB: predicated region body
PF: predicated region fallthrough
CT: control target
= control target key end

     0   :  { %s2146_s0 = inlined_call_operand.vmem [shape: f32[4,8,16], index: 0, kind: input, shape index: {}]   ;;  %s2147_s1 = inlined_call_operand.vmem [shape: f32[4,16,32], index: 1, kind: input, shape index: {}]   ;;  %s2148_s2 = inlined_call_operand.vmem [shape: f32[4,1,32], index: 2, kind: input, shape index: {}]   ;;  %s2149_s3 = inlined_call_operand.vmem [shape: f32[4,32,32], index: 3, kind: input, shape index: {}]   ;;  %s2150_s4 = inlined_call_operand.vmem [shape: f32[4,1,32], index: 4, kind: input, shape index: {}]   ;;  %s2151_s5 = inlined_call_operand.vmem [shape: f32[4,32,8], index: 5, kind: input, shape index: {}]   ;;  %s2152_s6 = inlined_call_operand.vmem [shape: f32[4,1,8], index: 6, kind: input, shape index: {}]   ;;  %s2153_s7 = inlined_call_operand.vmem [shape: f32[4,32,8], index: 7, kind: input, shape index: {}]   ;;  %s2154_s8 = inlined_call_operand.vmem [shape: f32[4,1,8], index: 8, kind: input, shape index: {}]   ;;  %s2155_s9 = inlined_call_operand.hbm [shape: f32[4,8,8], index: 9, kind: output, shape index: {0}]   ;;  %s2156_s10 = inlined_call_operand.hbm [shape: f32[4,8,8], index: 10, kind: output, shape index: {1}]  }
   0x1   :  { %2159 = sst [smem:[#allocation9_spill]] %s2146_s0 }
   0x2   :  { %16 = vsyncpa [#allocation3], 0 }
   0x3   :  { %18 = vsyncpa [#allocation3 + $0x1], 0 }
   0x4   :  { %19 = vsyncpa [#allocation5], 0 }
   0x5   :  { %21 = vsyncpa [#allocation5 + $0x1], 0  ;;  %s1894_s13 = smov 0   ;;  %s1896_s14 = smov 0  }
   0x6   :  { %s1898_s15 = smov 0   ;;  %s1900_s16 = smov 0  }
   0x7 LB: > { %s1915_s17 = sadd.s32 4294967295, %s1831_s16   ;;  %s1505_s18 = sadd.s32 4294967294, %s1831_s16   ;;  %s1831_s16 = sphi %s1900_s16, %s2171_s16   ;;  %s1827_s15 = sphi %s1898_s15, %s2170_s15   ;;  %s1823_s14 = sphi %s1896_s14, %s2169_s14   ;;  %s1819_s13 = sphi %s1894_s13, %s2168_s13  }
   0x8   : > { %s1919_s19 = sadd.s32 1, %s1831_s16   ;;  %s268_s20 = sadd.s32 1, %s1827_s15 }
   0x9   : > { %s265_s21 = ssub.s32 %s1831_s16, %s1919_s19  ;;  %p278_p0 = scmp.ne.s32.totalorder %s1827_s15, %s1823_s14 }
   0xa   : > { %p266_p1 = scmp.eq.s32.totalorder %s265_s21, 0  ;;  %p279_p2 = scmp.eq.s32.totalorder %s1915_s17, 1 }
   0xb   : > { %p284_p3 = scmp.ne.s32.totalorder %s1823_s14, %s1819_s13  ;;  %p285_p4 = scmp.eq.s32.totalorder %s1505_s18, 1 }
   0xc   : > { %s1930_s22 = scalar_select %p266_p1, %s1827_s15, %s268_s20  }
   0xd   : > { %p1932_p5 = por %p279_p2, %p278_p0  ;;  %p1936_p6 = por %p285_p4, %p284_p3 }
   0xe   : > { %2160 = sst [smem:[#allocation8_spill]] %s1930_s22  ;;  %p1508_p7 = scmp.ge.s32.totalorder %s1831_s16, 1 }
   0xf   : > { %p410_p8 = scmp.lt.s32.totalorder %s1831_s16, 3 }
  0x11   : > { %p411_p9 = pnand %p1508_p7, %p410_p8 }
  0x12   : > { %s1511_s25 = sshll.u32 (!%p411_p9), %s1915_s17, 1  ;;  %s2163_s0 = sld [smem:[#allocation9_spill]] (!%p411_p9) }
  0x13   : > { %414 = sbr.rel (%p411_p9) target bundleno = 739 (0x2e3), region = 56  ;;  %p494_p10 = scmp.lt.s32.totalorder (!%p411_p9), %s1511_s25, 3 }
  0x18   : > { %v1833_v0 = vmov 0.0   ;;  %vm1834_vm0 = vmmov 0   ;;  %s2173_s25 = smov (!%p494_p10, %s1511_s25), 3  ;;  %vm569_vm1 = vcmask 130048   ;;  %vm740_vm2 = vcmask 261120  }
  0x19   : > { %1597 = vmatprep.subr.mxu0 %v1833_v0  ;;  %1604 = vmatprep.subr.mxu1 %v1833_v0  ;;  %s1555_s26 = sshll.u32 %s2173_s25, 4  ;;  %s1512_s27 = sshll.u32 %s2173_s25, 3  ;;  %vm1287_vm3 = vcmask 64512  }
  0x1a   : > { %1601 = vmatprep.mubr.msk.f32.mxu0 %vm1834_vm0, %v1833_v0  ;;  %1608 = vmatprep.mubr.msk.f32.mxu1 %vm1834_vm0, %v1833_v0  ;;  %s504_s30 = scalar_lea.vmem %s2147_s1, %s1555_s26  ;;  %s497_s18 = scalar_lea.vmem %s2163_s0, %s1512_s27 }
  0x1b   : > { %v552_v1 = vld [vmem:[%s504_s30 + $0x8] sm:$0xff]  ;;  %v554_v2 = vld [vmem:[%s504_s30 + $0x18] sm:$0xff]  ;;  %v551_v3 = vld [vmem:[%s504_s30] sm:$0xff]  ;;  %s1960_s20 = sshll.u32 %s2173_s25, 5  ;;  %s509_s28 = scalar_lea.vmem %s2148_s2, %s2173_s25 }
  0x1c   : > { %1598 = vmatpush3.msra.mxu0 %v552_v1  ;;  %1605 = vmatpush3.msra.mxu1 %v554_v2  ;;  %v553_v4 = vld [vmem:[%s504_s30 + $0x10] sm:$0xff]  ;;  %v549_v5 = vld [vmem:[%s497_s18] sm:$0xff]  ;;  %v550_v6 = vld [vmem:[%s497_s18 + $0x8] sm:$0xff]  ;;  %s516_s26 = scalar_lea.vmem %s2149_s3, %s1960_s20  ;;  %s1990_s11 = scalar_lea.vmem %s2151_s5, %s1960_s20 }
  0x1d   : > { %1599 = vmatprep.subr.mxu0 %v1833_v0  ;;  %1606 = vmatprep.subr.mxu1 %v1833_v0  ;;  %v721_v7 = vld [vmem:[%s516_s26 + $0x18] sm:$0xff]  ;;  %v720_v9 = vld [vmem:[%s516_s26 + $0x10] sm:$0xff]  ;;  %v719_v11 = vld [vmem:[%s516_s26 + $0x8] sm:$0xff]  ;;  %s521_s21 = scalar_lea.vmem %s2150_s4, %s2173_s25  ;;  %s540_s27 = scalar_lea.vmem %s2153_s7, %s1960_s20 }
  0x1e   : > { %1600 = vmatpush3.msra.mxu0 %v551_v3  ;;  %1607 = vmatpush3.msra.mxu1 %v553_v4  ;;  %v725_v8 = vld [vmem:[%s516_s26 + $0x38] sm:$0xff]  ;;  %v724_v10 = vld [vmem:[%s516_s26 + $0x30] sm:$0xff]  ;;  %v723_v12 = vld [vmem:[%s516_s26 + $0x28] sm:$0xff]  ;;  %s2037_s20 = sand.u32 1, %s1823_s14  }
  0x1f   : > { %1602 = vmatmul.mubr.msk.f32.vlgmr.msra.gmra.mxu0 %vm569_vm1, %v549_v5  ;;  %1609 = vmatmul.mubr.msk.f32.vlgmr.msra.gmra.mxu1 %vm569_vm1, %v550_v6  ;;  %v718_v13 = vld [vmem:[%s516_s26] sm:$0xff]  ;;  %v892_v25 = vld [vmem:[%s1990_s11 + $0x18] sm:$0xff]  ;;  %v891_v27 = vld [vmem:[%s1990_s11 + $0x10] sm:$0xff] }
  0x20   : > { %1611 = vmatprep.subr.mxu0 %v1833_v0  ;;  %1622 = vmatprep.subr.mxu1 %v1833_v0  ;;  %v722_v14 = vld [vmem:[%s516_s26 + $0x20] sm:$0xff]  ;;  %v896_v26 = vld [vmem:[%s1990_s11 + $0x38] sm:$0xff]  ;;  %v895_v28 = vld [vmem:[%s1990_s11 + $0x30] sm:$0xff]  ;;  %s1835_s26 = smov [#allocation2]  }
  0x21   : > { %1612 = vmatpush3.msra.mxu0 %v721_v7  ;;  %1623 = vmatpush3.msra.mxu1 %v725_v8  ;;  %v1529_v15 = vld [vmem:[%s509_s28] ss:$0 sm:$0xff]  ;;  %v1530_v16 = vld [vmem:[%s509_s28 + $0x1] ss:$0 sm:$0xff]  ;;  %v890_v29 = vld [vmem:[%s1990_s11 + $0x8] sm:$0xff]  ;;  %s2157_s28 = sshll.u32 %s2037_s20, 4 }
  0x22   : > { %1613 = vmatprep.subr.mxu0 %v1833_v0  ;;  %1624 = vmatprep.subr.mxu1 %v1833_v0  ;;  %v894_v30 = vld [vmem:[%s1990_s11 + $0x28] sm:$0xff]  ;;  %v889_v31 = vld [vmem:[%s1990_s11] sm:$0xff]  ;;  %v1060_v43 = vld [vmem:[%s540_s27 + $0x18] sm:$0xff]  ;;  %s485_s12 = scalar_lea.vmem [#allocation2], %s2157_s28  ;;  %s1745_s22 = sshll.u32 %s1835_s26, 4  ;;  %s1746_s22 = int_to_ptr.vmem [resolvable:$false] %s1745_s22 }
  0x23   : > { %1619 = vmatprep.mubr.msk.f32.mxu0 %vm1834_vm0, %v1833_v0  ;;  %1630 = vmatprep.mubr.msk.f32.mxu1 %vm1834_vm0, %v1833_v0  ;;  %v893_v32 = vld [vmem:[%s1990_s11 + $0x20] sm:$0xff]  ;;  %v1064_v44 = vld [vmem:[%s540_s27 + $0x38] sm:$0xff]  ;;  %v1059_v45 = vld [vmem:[%s540_s27 + $0x10] sm:$0xff]  ;;  %s533_s11 = scalar_lea.vmem %s2152_s6, %s2173_s25  ;;  %s1311_s18 = sshll.u32 %s485_s12, 4  ;;  %s2047_s18 = int_to_ptr.vmem [resolvable:$true] %s1311_s18 }
  0x24   : > { %1614 = vmatpush3.msra.mxu0 %v720_v9  ;;  %1625 = vmatpush3.msra.mxu1 %v724_v10  ;;  %v1533_v33 = vld [vmem:[%s521_s21] ss:$0 sm:$0xff]  ;;  %v1534_v34 = vld [vmem:[%s521_s21 + $0x1] ss:$0 sm:$0xff]  ;;  %v1063_v46 = vld [vmem:[%s540_s27 + $0x30] sm:$0xff]  ;;  %s2158_s21 = sshll.u32 %s1915_s17, 8  ;;  %p1748_p0 = scmp.lt.s32.totalorder %s2047_s18, %s1746_s22 }
  0x25   : > { %1615 = vmatprep.subr.mxu0 %v1833_v0  ;;  %1626 = vmatprep.subr.mxu1 %v1833_v0  ;;  %v1058_v47 = vld [vmem:[%s540_s27 + $0x8] sm:$0xff]  ;;  %v1057_v49 = vld [vmem:[%s540_s27] sm:$0xff]  ;;  %s1741_s0 = scalar_lea.vmem %s2047_s18, 256 }
  0x26   : > { %1616 = vmatpush3.msra.mxu0 %v719_v11  ;;  %1627 = vmatpush3.msra.mxu1 %v723_v12  ;;  %v1062_v48 = vld [vmem:[%s540_s27 + $0x28] sm:$0xff]  ;;  %v1061_v50 = vld [vmem:[%s540_s27 + $0x20] sm:$0xff]  ;;  %s2054_s27 = scalar_lea.hbm %s2155_s9, %s2158_s21  ;;  %p1742_p11 = scmp.ne.s32.totalorder %s2047_s18, %s1741_s0 }
  0x27   : > { %1617 = vmatprep.subr.mxu0 %v1833_v0  ;;  %1628 = vmatprep.subr.mxu1 %v1833_v0  ;;  %v1537_v51 = vld [vmem:[%s533_s11] ss:$0 sm:$0xff]  ;;  %v1538_v52 = vld [vmem:[%s533_s11 + $0x1] ss:$0 sm:$0xff]  ;;  %s2062_s11 = scalar_lea.vmem %s2154_s8, %s2173_s25  ;;  %s1747_s21 = scalar_lea.vmem %s1746_s22, 512 }
  0x28   : > { %1618 = vmatpush3.msra.mxu0 %v718_v13  ;;  %1629 = vmatpush3.msra.mxu1 %v722_v14  ;;  %p1743_p12 = pnand %p1742_p11, %p1932_p5  ;;  %p1749_p1 = scmp.lt.s32.totalorder %s1747_s21, %s1741_s0 }
  0x29   : > { %1633 = vmatprep.subr.mxu0 %v1833_v0  ;;  %1644 = vmatprep.subr.mxu1 %v1833_v0 }
  0x2a   : > { %p1744_p13 = pneg %p1743_p12  ;;  %p1750_p2 = por %p1749_p1, %p1748_p0 }
  0x2c   : > { %p1751_p3 = pnand %p1750_p2, %p1744_p13 }
  0xdf   : > { %v639_v17 = vpop.f32.mrf.mxu0  ;;  %v712_v18 = vpop.f32.mrf.mxu1 }
  0xe0   : > { %v640_v19 = vadd.f32 %v1529_v15, %v639_v17  ;;  %v713_v20 = vadd.f32 %v1530_v16, %v712_v18 }
  0xe1   : > { %v1603_v21 = vpop.f32.mrf.mxu0  ;;  %v1610_v22 = vpop.f32.mrf.mxu1 }
  0xe2   : > { %v716_v23 = vmax.f32 %v640_v19, 0.0  ;;  %v717_v24 = vmax.f32 %v713_v20, 0.0 }
  0xe4   : > { %1620 = vmatmul.mubr.msk.f32.vlgmr.msra.gmra.mxu0 %vm740_vm2, %v716_v23  ;;  %1631 = vmatmul.mubr.msk.f32.vlgmr.msra.gmra.mxu1 %vm740_vm2, %v717_v24 }
  0xe5   : > { %1634 = vmatpush3.msra.mxu0 %v892_v25  ;;  %1645 = vmatpush3.msra.mxu1 %v896_v26 }
  0xe6   : > { %1635 = vmatprep.subr.mxu0 %v1833_v0  ;;  %1646 = vmatprep.subr.mxu1 %v1833_v0 }
  0xe7   : > { %1636 = vmatpush3.msra.mxu0 %v891_v27  ;;  %1647 = vmatpush3.msra.mxu1 %v895_v28 }
  0xe8   : > { %1637 = vmatprep.subr.mxu0 %v1833_v0  ;;  %1648 = vmatprep.subr.mxu1 %v1833_v0 }
  0xe9   : > { %1641 = vmatprep.mubr.msk.f32.mxu0 %vm1834_vm0, %v1833_v0  ;;  %1652 = vmatprep.mubr.msk.f32.mxu1 %vm1834_vm0, %v1833_v0 }
  0xea   : > { %1638 = vmatpush3.msra.mxu0 %v890_v29  ;;  %1649 = vmatpush3.msra.mxu1 %v894_v30 }
  0xeb   : > { %1639 = vmatprep.subr.mxu0 %v1833_v0  ;;  %1650 = vmatprep.subr.mxu1 %v1833_v0 }
  0xec   : > { %1640 = vmatpush3.msra.mxu0 %v889_v31  ;;  %1651 = vmatpush3.msra.mxu1 %v893_v32 }
  0xed   : > { %1655 = vmatprep.subr.mxu0 %v1833_v0  ;;  %1666 = vmatprep.subr.mxu1 %v1833_v0 }
 0x1a4   : > { %v810_v35 = vpop.f32.mrf.mxu0  ;;  %v883_v36 = vpop.f32.mrf.mxu1 }
 0x1a5   : > { %v811_v37 = vadd.f32 %v1533_v33, %v810_v35  ;;  %v884_v38 = vadd.f32 %v1534_v34, %v883_v36 }
 0x1a6   : > { %v1621_v39 = vpop.f32.mrf.mxu0  ;;  %v1632_v40 = vpop.f32.mrf.mxu1 }
 0x1a7   : > { %v887_v41 = vmax.f32 %v811_v37, 0.0  ;;  %v888_v42 = vmax.f32 %v884_v38, 0.0 }
 0x1a9   : > { %1642 = vmatmul.mubr.msk.f32.vlgmr.msra.gmra.mxu0 %vm740_vm2, %v887_v41  ;;  %1653 = vmatmul.mubr.msk.f32.vlgmr.msra.gmra.mxu1 %vm740_vm2, %v888_v42 }
 0x1aa   : > { %1656 = vmatpush3.msra.mxu0 %v1060_v43  ;;  %1667 = vmatpush3.msra.mxu1 %v1064_v44 }
 0x1ab   : > { %1657 = vmatprep.subr.mxu0 %v1833_v0  ;;  %1668 = vmatprep.subr.mxu1 %v1833_v0 }
 0x1ac   : > { %1658 = vmatpush3.msra.mxu0 %v1059_v45  ;;  %1669 = vmatpush3.msra.mxu1 %v1063_v46 }
 0x1ad   : > { %1659 = vmatprep.subr.mxu0 %v1833_v0  ;;  %1670 = vmatprep.subr.mxu1 %v1833_v0 }
 0x1ae   : > { %1660 = vmatpush3.msra.mxu0 %v1058_v47  ;;  %1671 = vmatpush3.msra.mxu1 %v1062_v48 }
 0x1af   : > { %1661 = vmatprep.subr.mxu0 %v1833_v0  ;;  %1672 = vmatprep.subr.mxu1 %v1833_v0 }
 0x1b0   : > { %1662 = vmatpush3.msra.mxu0 %v1057_v49  ;;  %1663 = vmatprep.mubr.msk.f32.mxu0 %vm1834_vm0, %v1833_v0 }
 0x1b1   : > { %1673 = vmatpush3.msra.mxu1 %v1061_v50  ;;  %1674 = vmatprep.mubr.msk.f32.mxu1 %vm1834_vm0, %v1833_v0 }
 0x1b2   : > { %1664 = vmatmul.mubr.msk.f32.vlgmr.msra.gmra.mxu0 %vm740_vm2, %v887_v41  ;;  %1675 = vmatmul.mubr.msk.f32.vlgmr.msra.gmra.mxu1 %vm740_vm2, %v888_v42 }
 0x269   : > { %v980_v53 = vpop.f32.mrf.mxu0  ;;  %v1053_v54 = vpop.f32.mrf.mxu1 }
 0x26a   : > { %v981_v55 = vadd.f32 %v1537_v51, %v980_v53  ;;  %v1054_v56 = vadd.f32 %v1538_v52, %v1053_v54 }
 0x26b   : > { %v1643_v57 = vpop.f32.mrf.mxu0  ;;  %v1654_v58 = vpop.f32.mrf.mxu1 }
 0x26c   : > { %1288 = vst.msk [vmem:[%s485_s12] sm:$0xff] %vm1287_vm3, %v981_v55  ;;  %1289 = vst.msk [vmem:[%s485_s12 + $0x8] sm:$0xff] %vm1287_vm3, %v1054_v56 }
 0x26d   : > { %1754 = shalt.err (!%p1751_p3)
}
 0x26e   : > { %s1755_s25 = scalar_lea.hbm %s2054_s27, 256  ;;  %s1759_s30 = scalar_lea.hbm %s2155_s9, 512 }
 0x26f   : > { %p1756_p4 = scmp.ne.s32.totalorder %s2054_s27, %s1755_s25  ;;  %p1760_p9 = scmp.lt.s32.totalorder %s2054_s27, %s2155_s9 }
 0x270   : > { %p1761_p10 = scmp.lt.s32.totalorder %s1759_s30, %s1755_s25 }
 0x271   : > { %p1757_p7 = pnand %p1756_p4, %p1932_p5 }
 0x272   : > { %p1762_p11 = por %p1761_p10, %p1760_p9 }
 0x273   : > { %p1758_p8 = pneg %p1757_p7 }
 0x275   : > { %p1763_p12 = pnand %p1762_p11, %p1758_p8 }
 0x277   : > { %1766 = shalt.err (!%p1763_p12)
}
 0x278   : > { %s1836_s0 = smov 128   ;;  %s1837_s21 = smov 8   ;;  %v1541_v59 = vld [vmem:[%s2062_s11] ss:$0 sm:$0xff]  ;;  %v1542_v60 = vld [vmem:[%s2062_s11 + $0x1] ss:$0 sm:$0xff]  ;;  %v1145_v61 = vpop.f32.mrf.mxu0  ;;  %v1215_v62 = vpop.f32.mrf.mxu1 }
 0x279   : > { %s2164_s22 = scalar_lea.sflag [#allocation3], %s2037_s20  ;;  %v1146_v63 = vadd.f32 %v1541_v59, %v1145_v61  ;;  %v1216_v0 = vadd.f32 %v1542_v60, %v1215_v62  ;;  %s2165_s28 = sshll.u32 %s2037_s20, 4 }
 0x27a   : > { %1677 = dma.vmem_to_hbm [thread:$0]  (%p1932_p5), %s2047_s18, 256, %s2054_s27, %s2164_s22, %s1836_s0, %s1836_s0, %s1837_s21   ;;  %v1665_v1 = vpop.f32.mrf.mxu0  ;;  %v1676_v2 = vpop.f32.mrf.mxu1 }
 0x27b   : > { %v1219_v3 = vsub.f32 2.0, %v1146_v63  ;;  %v1220_v4 = vsub.f32 2.0, %v1216_v0  ;;  %s492_s18 = scalar_lea.vmem [#allocation4], %s2165_s28  ;;  %s2166_s11 = sshll.u32 %s1915_s17, 8 }
 0x27c   : > { %s1327_s27 = sshll.u32 %s492_s18, 4  ;;  %s2099_s29 = scalar_lea.hbm %s2156_s10, %s2166_s11  ;;  %s2101_s27 = int_to_ptr.vmem [resolvable:$true] %s1327_s27 }
 0x27d   : > { %v1223_v5 = vand.u32 2147483647, %v1219_v3  ;;  %v1224_v6 = vand.u32 2147483647, %v1220_v4  ;;  %v1221_v25 = vmax.f32 %v1219_v3, 0.0  ;;  %v1222_v29 = vmax.f32 %v1220_v4, 0.0 }
 0x27e   : > { %s1298_s30 = scalar_lea.sflag [#allocation5], %s2037_s20  ;;  %s1767_s26 = scalar_lea.vmem %s2101_s27, 256 }
 0x27f   : > { %v1225_v7 = vsub.f32 0.0, %v1223_v5  ;;  %v1226_v8 = vsub.f32 0.0, %v1224_v6  ;;  %p1768_p13 = scmp.ne.s32.totalorder %s2101_s27, %s1767_s26  ;;  %s1838_s17 = smov [#allocation4]  }
 0x280   : > { %s1771_s22 = sshll.u32 %s1838_s17, 4  ;;  %s1772_s22 = int_to_ptr.vmem [resolvable:$false] %s1771_s22 }
 0x281   : > { %v1227_v9 = vmul.f32 1.442695, %v1225_v7  ;;  %v1229_v10 = vmul.f32 1.442695, %v1226_v8  ;;  %p1769_p0 = pnand %p1768_p13, %p1932_p5  ;;  %s1773_s28 = scalar_lea.vmem %s1772_s22, 512 }
 0x282   : > { %p1774_p2 = scmp.lt.s32.totalorder %s2101_s27, %s1772_s22  ;;  %p1775_p3 = scmp.lt.s32.totalorder %s1773_s28, %s1767_s26 }
 0x283   : > { %1725 = vpow2.f32 %v1227_v9  ;;  %p1770_p1 = pneg %p1769_p0 }
 0x284   : > { %1727 = vpow2.f32 %v1229_v10  ;;  %p1776_p4 = por %p1775_p3, %p1774_p2 }
 0x286   : > { %p1777_p7 = pnand %p1776_p4, %p1770_p1 }
 0x290   : > { %v1726_v11 = vpop.eup %1725 }
 0x291   : > { %v1728_v12 = vpop.eup %1727  ;;  %v1231_v13 = vadd.f32 1.0, %v1726_v11  ;;  %v1234_v15 = vmul.f32 -0.5, %v1726_v11  ;;  %v1237_v18 = vand.u32 2147483647, %v1726_v11 }
 0x292   : > { %v1240_v14 = vadd.f32 1.0, %v1728_v12  ;;  %v1243_v16 = vmul.f32 -0.5, %v1728_v12  ;;  %v1246_v20 = vand.u32 2147483647, %v1728_v12 }
 0x293   : > { %1729 = vlog2.f32 %v1231_v13  ;;  %v1235_v17 = vadd.f32 1.0, %v1234_v15  ;;  %vm1238_vm4 = vcmp.lt.f32.partialorder %v1237_v18, 0.0004427343 }
 0x294   : > { %1731 = vlog2.f32 %v1240_v14  ;;  %v1244_v19 = vadd.f32 1.0, %v1243_v16  ;;  %vm1247_vm5 = vcmp.lt.f32.partialorder %v1246_v20, 0.0004427343 }
 0x295   : > { %v1236_v24 = vmul.f32 %v1726_v11, %v1235_v17 }
 0x296   : > { %v1245_v27 = vmul.f32 %v1728_v12, %v1244_v19 }
 0x2a0   : > { %v1730_v21 = vpop.eup %1729 }
 0x2a1   : > { %v1732_v22 = vpop.eup %1731  ;;  %v1233_v23 = vmul.f32 0.6931472, %v1730_v21 }
 0x2a2   : > { %v1242_v26 = vmul.f32 0.6931472, %v1732_v22 }
 0x2a3   : > { %v1239_v28 = vsel %vm1238_vm4, %v1236_v24, %v1233_v23 }
 0x2a4   : > { %v1249_v30 = vadd.f32 %v1239_v28, %v1221_v25  ;;  %v1248_v31 = vsel %vm1247_vm5, %v1245_v27, %v1242_v26 }
 0x2a5   : > { %v1250_v32 = vadd.f32 %v1248_v31, %v1222_v29 }
 0x2a6   : > { %v1251_v33 = vsub.f32 2.0, %v1249_v30 }
 0x2a7   : > { %v1252_v34 = vsub.f32 2.0, %v1250_v32 }
 0x2a8   : > { %v1545_v35 = vadd.f32 20.0, %v1251_v33 }
 0x2a9   : > { %v1546_v36 = vadd.f32 20.0, %v1252_v34 }
 0x2aa   : > { %v1257_v37 = vand.u32 2147483647, %v1545_v35  ;;  %v1255_v57 = vmax.f32 %v1545_v35, 0.0 }
 0x2ab   : > { %v1258_v38 = vand.u32 2147483647, %v1546_v36  ;;  %v1256_v61 = vmax.f32 %v1546_v36, 0.0 }
 0x2ac   : > { %v1259_v39 = vsub.f32 0.0, %v1257_v37 }
 0x2ad   : > { %v1260_v40 = vsub.f32 0.0, %v1258_v38 }
 0x2ae   : > { %v1261_v41 = vmul.f32 1.442695, %v1259_v39 }
 0x2af   : > { %v1263_v42 = vmul.f32 1.442695, %v1260_v40 }
 0x2b0   : > { %1733 = vpow2.f32 %v1261_v41 }
 0x2b1   : > { %1735 = vpow2.f32 %v1263_v42 }
 0x2bd   : > { %v1734_v43 = vpop.eup %1733 }
 0x2be   : > { %v1736_v44 = vpop.eup %1735  ;;  %v1265_v45 = vadd.f32 1.0, %v1734_v43  ;;  %v1268_v47 = vmul.f32 -0.5, %v1734_v43  ;;  %v1271_v50 = vand.u32 2147483647, %v1734_v43 }
 0x2bf   : > { %v1274_v46 = vadd.f32 1.0, %v1736_v44  ;;  %v1277_v48 = vmul.f32 -0.5, %v1736_v44  ;;  %v1280_v52 = vand.u32 2147483647, %v1736_v44 }
 0x2c0   : > { %1737 = vlog2.f32 %v1265_v45  ;;  %v1269_v49 = vadd.f32 1.0, %v1268_v47  ;;  %vm1272_vm6 = vcmp.lt.f32.partialorder %v1271_v50, 0.0004427343 }
 0x2c1   : > { %1739 = vlog2.f32 %v1274_v46  ;;  %v1278_v51 = vadd.f32 1.0, %v1277_v48  ;;  %vm1281_vm7 = vcmp.lt.f32.partialorder %v1280_v52, 0.0004427343 }
 0x2c2   : > { %v1270_v56 = vmul.f32 %v1734_v43, %v1269_v49 }
 0x2c3   : > { %v1279_v59 = vmul.f32 %v1736_v44, %v1278_v51 }
 0x2cd   : > { %v1738_v53 = vpop.eup %1737 }
 0x2ce   : > { %v1740_v54 = vpop.eup %1739  ;;  %v1267_v55 = vmul.f32 0.6931472, %v1738_v53 }
 0x2cf   : > { %v1276_v58 = vmul.f32 0.6931472, %v1740_v54 }
 0x2d0   : > { %v1273_v60 = vsel %vm1272_vm6, %v1270_v56, %v1267_v55 }
 0x2d1   : > { %v1283_v62 = vadd.f32 %v1273_v60, %v1255_v57  ;;  %v1282_v63 = vsel %vm1281_vm7, %v1279_v59, %v1276_v58 }
 0x2d2   : > { %v1284_v0 = vadd.f32 %v1282_v63, %v1256_v61 }
 0x2d3   : > { %v1285_v1 = vadd.f32 -20.0, %v1283_v62 }
 0x2d4   : > { %v1286_v2 = vadd.f32 -20.0, %v1284_v0 }
 0x2d5   : > { %1290 = vst.msk [vmem:[%s492_s18] sm:$0xff] %vm1287_vm3, %v1285_v1 }
 0x2d6   : > { %1291 = vst.msk [vmem:[%s492_s18 + $0x8] sm:$0xff] %vm1287_vm3, %v1286_v2 }
 0x2d7   : > { %1780 = shalt.err (!%p1777_p7)
}
 0x2d8   : > { %s1781_s18 = scalar_lea.hbm %s2099_s29, 256  ;;  %s1785_s25 = scalar_lea.hbm %s2156_s10, 512 }
 0x2d9   : > { %p1782_p8 = scmp.ne.s32.totalorder %s2099_s29, %s1781_s18  ;;  %p1786_p11 = scmp.lt.s32.totalorder %s2099_s29, %s2156_s10 }
 0x2da   : > { %p1787_p12 = scmp.lt.s32.totalorder %s1785_s25, %s1781_s18 }
 0x2db   : > { %p1783_p9 = pnand %p1782_p8, %p1932_p5 }
 0x2dc   : > { %p1788_p13 = por %p1787_p12, %p1786_p11 }
 0x2dd   : > { %p1784_p10 = pneg %p1783_p9 }
 0x2df   : > { %p1789_p0 = pnand %p1788_p13, %p1784_p10 }
 0x2e1   : > { %1792 = shalt.err (!%p1789_p0)
}
 0x2e2   : > { %1678 = dma.vmem_to_hbm [thread:$0]  (%p1932_p5), %s2101_s27, 256, %s2099_s29, %s1298_s30, %s1836_s0, %s1836_s0, %s1837_s21  }
 0x2e3 PF: > { %p1688_p1 = scmp.ge.s32.totalorder %s1831_s16, 2  ;;  %s1342_s26 = sand.u32 1, %s1819_s13  }
 0x2e4   : > { %s1343_s22 = scalar_lea.sflag [#allocation3], %s1342_s26 }
 0x2e5   : > { %p1682_p2 = pnand %p1688_p1, %p1936_p6 }
 0x2e7   : > { %p1683_p3 = pneg %p1682_p2 }
 0x2e9   : > { %1810 = dma.done.wait (%p1683_p3), %s1343_s22, 256  }
 0x2ea   : > { %1812 = vsyncadd (%p1683_p3), %s1343_s22, 4294967040  ;;  %s1352_s28 = scalar_lea.sflag [#allocation5], %s1342_s26 }
 0x2eb   : > { %1814 = dma.done.wait (%p1683_p3), %s1352_s28, 256  }
 0x2ec   : > { %1816 = vsyncadd (%p1683_p3), %s1352_s28, 4294967040  ;;  %s2167_s23 = sld [smem:[#allocation8_spill]]  ;;  %p24_p5 = scmp.ge.s32.totalorder %s1919_s19, 4  }
 0x2ed   : > { %s2168_s13 = smov %s1823_s14  ;;  %s2169_s14 = smov %s1827_s15 }
 0x2ee   : > { %s2171_s16 = smov %s1919_s19  ;;  %26 = sbr.rel (!%p24_p5) target bundleno = 7 (0x7), region = 132 }
 0x2f2   : > { %s2170_s15 = smov %s2167_s23 }
 0x2f3   :  { %1357 = vsyncpa [#allocation3], 1 }
 0x2f4   :  { %1359 = vsyncpa [#allocation3 + $0x1], 1 }
 0x2f5   :  { %1360 = vsyncpa [#allocation5], 1 }
 0x2f6   :  { %1362 = vsyncpa [#allocation5 + $0x1], 1 }

</bundles_post_ra>
